<compile_context>
chip_gen: v5e
topology: v5e:2x2
jax: 0.10.0
libtpu: 0.0.40
codegen_flags: <defaults>
</compile_context>

<pallas_src>
import math

import jax
import jax.numpy as jnp
from jax.experimental import pallas as pl
from jax.experimental.pallas import tpu as pltpu


def _round_up(x, m):
    return ((x + m - 1) // m) * m


def _cdiv(a, b):
    return (a + b - 1) // b


def _plan_dim(dim, granule, max_tile):
    """Minimal-padding tile plan for one dimension.

    Returns (tile, padded_dim, num_tiles) where tile is a multiple of
    `granule`, tile <= max_tile (when the dim doesn't fit one tile the blocks
    are near-equal), padded_dim = tile * num_tiles and the total padding is at
    most (granule - 1) per tile -- NOT rounded up to a whole tile.
    """
    max_tile = max(granule, (max_tile // granule) * granule)
    dim_g = _round_up(dim, granule)
    if dim_g <= max_tile:
        return dim_g, dim_g, 1
    g = _cdiv(dim_g, max_tile)
    tile = _round_up(_cdiv(dim_g, g), granule)
    return tile, tile * g, g


def _vmem_limit_bytes(tile_in, tile_out, H):
    """Scoped-VMEM request: double-buffered const/out tiles + weight tiles."""
    tile_bytes = tile_in * tile_out * 4
    weight_bytes = (tile_in * H + H * tile_out + tile_in + tile_out + 4 * H) * 4
    est = 2 * (2 * tile_bytes + weight_bytes) + tile_in * 4   # + a1 scratch
    # Floor 32 MiB (<= physical everywhere), cap 48 MiB (< v7x's 64 MiB VMEM).
    return int(min(max(est + (8 << 20), 32 << 20), 48 << 20))


# ----------------------------------------------------------------------------
# Kernels
# ----------------------------------------------------------------------------
def lowrank_kernel(lam_ref,        # SMEM (1,)        scalar-prefetch lambda
                   w_w_row_ref,    # VMEM (1, H)      w.weight as a row
                   w_b_row_ref,    # VMEM (1, H)      w.bias   as a row
                   w_w_col_ref,    # VMEM (H, 1)      w.weight as a column
                   w_b_col_ref,    # VMEM (H, 1)      w.bias   as a column
                   wa1_w_ref,      # VMEM (TI, H)     w_a1.weight tile (torch layout)
                   wa1_b_ref,      # VMEM (TI, 1)     w_a1.bias tile as a column
                   wa2_wT_ref,     # VMEM (H, TO)     w_a2.weight^T tile
                   wa2_b_ref,      # VMEM (1, TO)     w_a2.bias tile as a row
                   const_ref,      # VMEM (TI, TO)
                   out_ref,        # VMEM (TI, TO)
                   a1_scr):        # VMEM scratch (TI, 1)
    lam = lam_ref[0]
    j = pl.program_id(1)

    # a1 tile depends only on i: compute once per i-row (j is the inner,
    # sequential "arbitrary" axis) and keep it in VMEM scratch.
    @pl.when(j == 0)
    def _():
        h_col = jnp.maximum(w_w_col_ref[...] * lam + w_b_col_ref[...], 0.0)   # (H, 1)
        a1_scr[...] = (jnp.dot(wa1_w_ref[...], h_col,
                               preferred_element_type=jnp.float32)
                       + wa1_b_ref[...])                                      # (TI, 1)

    # a2 tile for this j (tiny (1,H)@(H,TO); hidden under the const-tile DMA).
    h_row = jnp.maximum(w_w_row_ref[...] * lam + w_b_row_ref[...], 0.0)       # (1, H)
    a2 = (jnp.dot(h_row, wa2_wT_ref[...], preferred_element_type=jnp.float32)
          + wa2_b_ref[...])                                                   # (1, TO)

    # Rank-1 update as a VPU broadcast FMA (no K=1 MXU matmul).
    out_ref[...] = const_ref[...] + a1_scr[...] * a2


def lowrank_diag_kernel(lam_ref,      # VMEM (L, 1)    batched lambdas as a column
                        w_w_row_ref,  # VMEM (1, H)
                        w_b_row_ref,  # VMEM (1, H)
                        wd_wT_ref,    # VMEM (H, OUTp) w_d.weight^T
                        wd_b_ref,     # VMEM (1, OUTp)
                        const_ref,    # VMEM (1, OUTp)
                        out_ref):     # VMEM (L, OUTp)
    h = jnp.maximum(lam_ref[...] * w_w_row_ref[...] + w_b_row_ref[...], 0.0)  # (L, H)
    out_ref[...] = (const_ref[...] + wd_b_ref[...]
                    + jnp.dot(h, wd_wT_ref[...],
                              preferred_element_type=jnp.float32))


# ----------------------------------------------------------------------------
# One-time parameter preparation (layout + padding done ONCE, not per call)
# ----------------------------------------------------------------------------
def prepare_lowrank_params(params, max_tile_in=512, max_tile_out=2048,
                           megacore_split=True):
    w_w, w_b = params["w_w"], params["w_b"]            # (H,1), (H,)
    wa1_w, wa1_b = params["wa1_w"], params["wa1_b"]    # (IN,H), (IN,)
    wa2_w, wa2_b = params["wa2_w"], params["wa2_b"]    # (OUT,H), (OUT,)
    const = params["const"]                            # (IN,OUT)

    H = w_w.shape[0]
    IN, OUT = const.shape

    # Lane dim (OUT) padded only to a multiple of 128, sublane dim (IN) only
    # to a multiple of 8; tiles exactly cover the padded dims.
    tile_out, OUT_p, gj = _plan_dim(OUT, 128, max_tile_out)
    tile_in, IN_p, gi = _plan_dim(IN, 8, max_tile_in)

    # v7x has 2 TensorCores; make sure the "parallel" i axis has >= 2 steps
    # whenever a single i-row of tiles carries enough bytes to matter.
    if (megacore_split and gi == 1 and IN_p >= 16
            and IN_p * tile_out * 4 >= (1 << 20)):
        tile_in, IN_p, gi = _plan_dim(IN, 8, _round_up(_cdiv(IN_p, 2), 8))

    pad_in, pad_out = IN_p - IN, OUT_p - OUT

    return {
        "H": H, "IN": IN, "OUT": OUT, "IN_p": IN_p, "OUT_p": OUT_p,
        "tile_in": tile_in, "tile_out": tile_out, "gi": gi, "gj": gj,
        "w_w_row": w_w.reshape(1, H).astype(jnp.float32),
        "w_b_row": w_b.reshape(1, H).astype(jnp.float32),
        "w_w_col": w_w.reshape(H, 1).astype(jnp.float32),
        "w_b_col": w_b.reshape(H, 1).astype(jnp.float32),
        "wa1_w": jnp.pad(wa1_w, ((0, pad_in), (0, 0))).astype(jnp.float32),
        "wa1_b_col": jnp.pad(wa1_b, (0, pad_in)).reshape(IN_p, 1).astype(jnp.float32),
        "wa2_wT": jnp.pad(wa2_w.T, ((0, 0), (0, pad_out))).astype(jnp.float32),
        "wa2_b_row": jnp.pad(wa2_b, (0, pad_out)).reshape(1, OUT_p).astype(jnp.float32),
        "const": jnp.pad(const, ((0, pad_in), (0, pad_out))).astype(jnp.float32),
    }


def prepare_diag_params(params):
    w_w, w_b = params["w_w"], params["w_b"]            # (H,1), (H,)
    wd_w, wd_b = params["wd_w"], params["wd_b"]        # (OUT,H), (OUT,)
    const = params["const"]                            # (OUT,)

    H = w_w.shape[0]
    OUT = const.shape[0]
    OUT_p = _round_up(OUT, 128)                        # lane-dense, single block
    pad = OUT_p - OUT

    return {
        "H": H, "OUT": OUT, "OUT_p": OUT_p,
        "w_w_row": w_w.reshape(1, H).astype(jnp.float32),
        "w_b_row": w_b.reshape(1, H).astype(jnp.float32),
        "wd_wT": jnp.pad(wd_w.T, ((0, 0), (0, pad))).astype(jnp.float32),
        "wd_b_row": jnp.pad(wd_b, (0, pad)).reshape(1, OUT_p).astype(jnp.float32),
        "const_row": jnp.pad(const, (0, pad)).reshape(1, OUT_p).astype(jnp.float32),
    }


# ----------------------------------------------------------------------------
# Forward wrappers
# ----------------------------------------------------------------------------
def lowrank_forward(lam, prep, unpad=True):
    """Non-diagonal LowRankNet.forward -> (in_, out_) matrix.

    With unpad=False the (IN_p, OUT_p) padded buffer is returned directly,
    avoiding a post-kernel copy when downstream consumers can index lazily.
    """
    H = prep["H"]
    ti, to = prep["tile_in"], prep["tile_out"]
    IN, OUT = prep["IN"], prep["OUT"]
    IN_p, OUT_p = prep["IN_p"], prep["OUT_p"]
    gi, gj = prep["gi"], prep["gj"]

    lam_arr = jnp.asarray(lam, jnp.float32).reshape((1,))

    grid_spec = pltpu.PrefetchScalarGridSpec(
        num_scalar_prefetch=1,
        grid=(gi, gj),
        in_specs=[
            pl.BlockSpec((1, H), lambda i, j, lam_ref: (0, 0)),    # w_w_row
            pl.BlockSpec((1, H), lambda i, j, lam_ref: (0, 0)),    # w_b_row
            pl.BlockSpec((H, 1), lambda i, j, lam_ref: (0, 0)),    # w_w_col
            pl.BlockSpec((H, 1), lambda i, j, lam_ref: (0, 0)),    # w_b_col
            pl.BlockSpec((ti, H), lambda i, j, lam_ref: (i, 0)),   # wa1_w tile
            pl.BlockSpec((ti, 1), lambda i, j, lam_ref: (i, 0)),   # wa1_b tile
            pl.BlockSpec((H, to), lambda i, j, lam_ref: (0, j)),   # wa2_wT tile
            pl.BlockSpec((1, to), lambda i, j, lam_ref: (0, j)),   # wa2_b tile
            pl.BlockSpec((ti, to), lambda i, j, lam_ref: (i, j)),  # const tile
        ],
        out_specs=pl.BlockSpec((ti, to), lambda i, j, lam_ref: (i, j)),
        scratch_shapes=[pltpu.VMEM((ti, 1), jnp.float32)],
    )

    out = pl.pallas_call(
        lowrank_kernel,
        out_shape=jax.ShapeDtypeStruct((IN_p, OUT_p), jnp.float32),
        grid_spec=grid_spec,
        compiler_params=pltpu.CompilerParams(
            # i parallel (megacore on v7x); j must be sequential because the
            # a1 scratch is carried across j within an i-row.
            dimension_semantics=("parallel", "arbitrary"),
            vmem_limit_bytes=_vmem_limit_bytes(ti, to, H)),
    )(lam_arr,
      prep["w_w_row"], prep["w_b_row"], prep["w_w_col"], prep["w_b_col"],
      prep["wa1_w"], prep["wa1_b_col"], prep["wa2_wT"], prep["wa2_b_row"],
      prep["const"])

    if unpad and (IN_p != IN or OUT_p != OUT):
        out = out[:IN, :OUT]
    return out


def lowrank_diag_forward(lams, prep):
    """Diagonal LowRankNet.forward.

    Accepts a scalar lambda (returns (out_,)) or a batch of L lambdas
    (returns (L, out_)) -- batching amortizes the launch cost. The whole
    output is a few KiB, so it is a single grid step / single tile.
    """
    lams_arr = jnp.asarray(lams, jnp.float32)
    scalar_input = (lams_arr.ndim == 0)
    lams_arr = jnp.atleast_1d(lams_arr)
    L = lams_arr.shape[0]
    Lp = _round_up(L, 8)
    lam_col = jnp.pad(lams_arr, (0, Lp - L)).reshape(Lp, 1)

    H, OUT, OUT_p = prep["H"], prep["OUT"], prep["OUT_p"]

    out = pl.pallas_call(
        lowrank_diag_kernel,
        out_shape=jax.ShapeDtypeStruct((Lp, OUT_p), jnp.float32),
        grid=(1,),
        in_specs=[
            pl.BlockSpec((Lp, 1), lambda j: (0, 0)),       # lambdas
            pl.BlockSpec((1, H), lambda j: (0, 0)),        # w_w_row
            pl.BlockSpec((1, H), lambda j: (0, 0)),        # w_b_row
            pl.BlockSpec((H, OUT_p), lambda j: (0, 0)),    # wd_wT
            pl.BlockSpec((1, OUT_p), lambda j: (0, 0)),    # wd_b
            pl.BlockSpec((1, OUT_p), lambda j: (0, 0)),    # const
        ],
        out_specs=pl.BlockSpec((Lp, OUT_p), lambda j: (0, 0)),
        compiler_params=pltpu.CompilerParams(dimension_semantics=("arbitrary",)),
    )(lam_col, prep["w_w_row"], prep["w_b_row"],
      prep["wd_wT"], prep["wd_b_row"], prep["const_row"])

    out = out[:L, :OUT]
    return out[0] if scalar_input else out


# ----------------------------------------------------------------------------
# Deterministic parameter initialization (mirrors the torch __init__ rules)
# ----------------------------------------------------------------------------
def xavier_uniform(key, shape, gain):
    fan_out, fan_in = shape                      # torch Linear weight layout
    bound = gain * math.sqrt(6.0 / (fan_in + fan_out))
    return jax.random.uniform(key, shape, jnp.float32, -bound, bound)


def linear_bias(key, out_features, in_features):
    bound = 1.0 / math.sqrt(in_features)
    return jax.random.uniform(key, (out_features,), jnp.float32, -bound, bound)


def init_lowrank_params(key, in_, out_, hidden,
                        init_const=1.0, init_lamb=1.0, init_lowrank=1e-4):
    ks = jax.random.split(key, 7)
    return {
        "w_w": xavier_uniform(ks[0], (hidden, 1), init_lamb),
        "w_b": linear_bias(ks[1], hidden, 1),
        "wa1_w": xavier_uniform(ks[2], (in_, hidden), init_lowrank),
        "wa1_b": linear_bias(ks[3], in_, hidden),
        "wa2_w": xavier_uniform(ks[4], (out_, hidden), init_lowrank),
        "wa2_b": linear_bias(ks[5], out_, hidden),
        "const": xavier_uniform(ks[6], (in_, out_), init_const),
    }


def init_diag_params(key, out_, hidden, init_lamb=1.0, init_lowrank=1e-4):
    ks = jax.random.split(key, 5)
    return {
        "w_w": xavier_uniform(ks[0], (hidden, 1), init_lamb),
        "w_b": linear_bias(ks[1], hidden, 1),
        "wd_w": xavier_uniform(ks[2], (out_, hidden), init_lowrank),
        "wd_b": linear_bias(ks[3], out_, hidden),
        "const": jax.random.normal(ks[4], (out_,), jnp.float32),
    }


# ----------------------------------------------------------------------------
# Pure-JAX references (mirror the torch forward exactly)
# ----------------------------------------------------------------------------
def ref_lowrank(lam, p):
    h = jax.nn.relu(p["w_w"][:, 0] * lam + p["w_b"])
    a1 = p["wa1_w"] @ h + p["wa1_b"]
    a2 = p["wa2_w"] @ h + p["wa2_b"]
    return p["const"] + jnp.outer(a1, a2)


def ref_diag(lam, p):
    h = jax.nn.relu(p["w_w"][:, 0] * lam + p["w_b"])
    return p["const"] + p["wd_w"] @ h + p["wd_b"]


if __name__ == "__main__":
    key = jax.random.PRNGKey(0)
    k1, k2, k3 = jax.random.split(key, 3)

    hidden = 32
    lam = 0.7

    # --- non-diagonal, small (single tile, OUT padded to 128 lanes) ----------
    p_small = init_lowrank_params(k1, 16, 16, hidden)
    prep_small = prepare_lowrank_params(p_small)
    out_small = jax.block_until_ready(lowrank_forward(lam, prep_small))
    ref_small = ref_lowrank(lam, p_small)
    assert out_small.shape == (16, 16)
    assert jnp.allclose(out_small, ref_small, rtol=1e-5, atol=1e-5), "lowrank small mismatch"

    # --- non-diagonal, larger, default tiles: streams 304x640 (no tile-
    # --- multiple padding), single grid step --------------------------------
    p_big = init_lowrank_params(k2, 300, 640, hidden)
    prep_big = prepare_lowrank_params(p_big)
    assert prep_big["OUT_p"] == 640 and prep_big["IN_p"] == 304   # minimal padding
    out_big = jax.block_until_ready(lowrank_forward(lam, prep_big))
    ref_big = ref_lowrank(lam, p_big)
    assert out_big.shape == (300, 640)
    assert jnp.allclose(out_big, ref_big, rtol=1e-5, atol=1e-5), "lowrank big mismatch"

    # --- same params, small tile caps: exercises the 2x3 grid, the a1 carry
    # --- across the sequential j axis, padding and the un-pad slice ----------
    prep_grid = prepare_lowrank_params(p_big, max_tile_in=152, max_tile_out=320)
    assert prep_grid["gi"] >= 2 and prep_grid["gj"] >= 2
    out_grid = jax.block_until_ready(lowrank_forward(lam, prep_grid))
    assert out_grid.shape == (300, 640)
    assert jnp.allclose(out_grid, ref_big, rtol=1e-5, atol=1e-5), "lowrank grid mismatch"

    # --- diagonal, scalar lambda ---------------------------------------------
    p_dg = init_diag_params(k3, out_=32, hidden=hidden)
    prep_dg = prepare_diag_params(p_dg)
    out_dg = jax.block_until_ready(lowrank_diag_forward(lam, prep_dg))
    ref_dg = ref_diag(lam, p_dg)
    assert out_dg.shape == (32,)
    assert jnp.allclose(out_dg, ref_dg, rtol=1e-5, atol=1e-5), "diag mismatch"

    # --- diagonal, batched lambdas -------------------------------------------
    lams = jnp.array([0.1, 0.7, 1.3], jnp.float32)
    out_dgb = jax.block_until_ready(lowrank_diag_forward(lams, prep_dg))
    ref_dgb = jax.vmap(lambda l: ref_diag(l, p_dg))(lams)
    assert out_dgb.shape == (3, 32)
    assert jnp.allclose(out_dgb, ref_dgb, rtol=1e-5, atol=1e-5), "diag batch mismatch"

    print("KERNEL_OK")
</pallas_src>

<mosaic_0001>
module attributes {stable_mosaic.version = 11 : i64} {
  func.func @lowrank_kernel(%arg0: i32, %arg1: i32, %arg2: memref<1xf32, #tpu.memory_space<smem>>, %arg3: memref<1x32xf32, #tpu.memory_space<vmem>>, %arg4: memref<1x32xf32, #tpu.memory_space<vmem>>, %arg5: memref<32x1xf32, #tpu.memory_space<vmem>>, %arg6: memref<32x1xf32, #tpu.memory_space<vmem>>, %arg7: memref<16x32xf32, #tpu.memory_space<vmem>>, %arg8: memref<16x1xf32, #tpu.memory_space<vmem>>, %arg9: memref<32x128xf32, #tpu.memory_space<vmem>>, %arg10: memref<1x128xf32, #tpu.memory_space<vmem>>, %arg11: memref<16x128xf32, #tpu.memory_space<vmem>>, %arg12: memref<16x128xf32, #tpu.memory_space<vmem>>, %arg13: memref<16x1xf32, #tpu.memory_space<vmem>>) attributes {dimension_semantics = [#tpu.dimension_semantics<parallel>, #tpu.dimension_semantics<arbitrary>], iteration_bounds = array<i64: 1, 1>, scalar_prefetch = 1 : i64, scratch_operands = 1 : i64, tpu.core_type = #tpu.core_type<tc>, window_params = [{pipeline_mode = #tpu.pipeline_mode<synchronous>, transform_indices = @transform_0, window_bounds = array<i64: 1, 32>}, {pipeline_mode = #tpu.pipeline_mode<synchronous>, transform_indices = @transform_1, window_bounds = array<i64: 1, 32>}, {pipeline_mode = #tpu.pipeline_mode<synchronous>, transform_indices = @transform_2, window_bounds = array<i64: 32, 1>}, {pipeline_mode = #tpu.pipeline_mode<synchronous>, transform_indices = @transform_3, window_bounds = array<i64: 32, 1>}, {transform_indices = @transform_4, window_bounds = array<i64: 16, 32>}, {transform_indices = @transform_5, window_bounds = array<i64: 16, 1>}, {transform_indices = @transform_6, window_bounds = array<i64: 32, 128>}, {transform_indices = @transform_7, window_bounds = array<i64: 1, 128>}, {transform_indices = @transform_8, window_bounds = array<i64: 16, 128>}, {transform_indices = @transform_9, window_bounds = array<i64: 16, 128>}]} {
    %c0 = arith.constant 0 : index
    %0 = memref.load %arg2[%c0] : memref<1xf32, #tpu.memory_space<smem>>
    %c0_i32 = arith.constant 0 : i32
    %1 = arith.cmpi eq, %arg1, %c0_i32 : i32
    %2 = arith.extui %1 : i1 to i32
    %c0_i32_0 = arith.constant 0 : i32
    %3 = arith.cmpi ne, %2, %c0_i32_0 : i32
    scf.if %3 {
      %c0_16 = arith.constant 0 : index
      %c0_17 = arith.constant 0 : index
      %22 = vector.load %arg5[%c0_16, %c0_17] : memref<32x1xf32, #tpu.memory_space<vmem>>, vector<32x1xf32>
      %23 = vector.broadcast %0 : f32 to vector<32x1xf32>
      %24 = arith.mulf %22, %23 : vector<32x1xf32>
      %c0_18 = arith.constant 0 : index
      %c0_19 = arith.constant 0 : index
      %25 = vector.load %arg6[%c0_18, %c0_19] : memref<32x1xf32, #tpu.memory_space<vmem>>, vector<32x1xf32>
      %26 = arith.addf %24, %25 : vector<32x1xf32>
      %cst_20 = arith.constant 0.000000e+00 : f32
      %27 = vector.broadcast %cst_20 : f32 to vector<32x1xf32>
      %28 = arith.maximumf %26, %27 : vector<32x1xf32>
      %c0_21 = arith.constant 0 : index
      %c0_22 = arith.constant 0 : index
      %29 = vector.load %arg7[%c0_21, %c0_22] : memref<16x32xf32, #tpu.memory_space<vmem>>, vector<16x32xf32>
      %cst_23 = arith.constant dense<0.000000e+00> : vector<16x1xf32>
      %30 = tpu.matmul %29, %28, %cst_23 {dimension_numbers = #tpu.dot_dimension_numbers<[1], [0], [0], [1], [0, 0, 1, 1], [], []>} : vector<16x32xf32>, vector<32x1xf32>, vector<16x1xf32> -> vector<16x1xf32>
      %c0_24 = arith.constant 0 : index
      %c0_25 = arith.constant 0 : index
      %31 = vector.load %arg8[%c0_24, %c0_25] : memref<16x1xf32, #tpu.memory_space<vmem>>, vector<16x1xf32>
      %32 = arith.addf %30, %31 : vector<16x1xf32>
      %c0_26 = arith.constant 0 : index
      %c0_27 = arith.constant 0 : index
      %33 = vector.load %arg13[%c0_26, %c0_27] : memref<16x1xf32, #tpu.memory_space<vmem>>, vector<16x1xf32>
      tpu.vector_store %arg13[%c0_26, %c0_27], %32 {strides = array<i32>} : memref<16x1xf32, #tpu.memory_space<vmem>>, vector<16x1xf32>,
    } else {
    }
    %c0_1 = arith.constant 0 : index
    %c0_2 = arith.constant 0 : index
    %4 = vector.load %arg3[%c0_1, %c0_2] : memref<1x32xf32, #tpu.memory_space<vmem>>, vector<1x32xf32>
    %5 = vector.broadcast %0 : f32 to vector<1x32xf32>
    %6 = arith.mulf %4, %5 : vector<1x32xf32>
    %c0_3 = arith.constant 0 : index
    %c0_4 = arith.constant 0 : index
    %7 = vector.load %arg4[%c0_3, %c0_4] : memref<1x32xf32, #tpu.memory_space<vmem>>, vector<1x32xf32>
    %8 = arith.addf %6, %7 : vector<1x32xf32>
    %cst = arith.constant 0.000000e+00 : f32
    %9 = vector.broadcast %cst : f32 to vector<1x32xf32>
    %10 = arith.maximumf %8, %9 : vector<1x32xf32>
    %c0_5 = arith.constant 0 : index
    %c0_6 = arith.constant 0 : index
    %11 = vector.load %arg9[%c0_5, %c0_6] : memref<32x128xf32, #tpu.memory_space<vmem>>, vector<32x128xf32>
    %cst_7 = arith.constant dense<0.000000e+00> : vector<1x128xf32>
    %12 = tpu.matmul %10, %11, %cst_7 {dimension_numbers = #tpu.dot_dimension_numbers<[1], [0], [0], [1], [0, 0, 1, 1], [], []>} : vector<1x32xf32>, vector<32x128xf32>, vector<1x128xf32> -> vector<1x128xf32>
    %c0_8 = arith.constant 0 : index
    %c0_9 = arith.constant 0 : index
    %13 = vector.load %arg10[%c0_8, %c0_9] : memref<1x128xf32, #tpu.memory_space<vmem>>, vector<1x128xf32>
    %14 = arith.addf %12, %13 : vector<1x128xf32>
    %c0_10 = arith.constant 0 : index
    %c0_11 = arith.constant 0 : index
    %15 = vector.load %arg11[%c0_10, %c0_11] : memref<16x128xf32, #tpu.memory_space<vmem>>, vector<16x128xf32>
    %c0_12 = arith.constant 0 : index
    %c0_13 = arith.constant 0 : index
    %16 = vector.load %arg13[%c0_12, %c0_13] : memref<16x1xf32, #tpu.memory_space<vmem>>, vector<16x1xf32>
    %17 = vector.broadcast %16 : vector<16x1xf32> to vector<16x128xf32>
    %18 = vector.broadcast %14 : vector<1x128xf32> to vector<16x128xf32>
    %19 = arith.mulf %17, %18 : vector<16x128xf32>
    %20 = arith.addf %15, %19 : vector<16x128xf32>
    %c0_14 = arith.constant 0 : index
    %c0_15 = arith.constant 0 : index
    %21 = vector.load %arg12[%c0_14, %c0_15] : memref<16x128xf32, #tpu.memory_space<vmem>>, vector<16x128xf32>
    tpu.vector_store %arg12[%c0_14, %c0_15], %20 {strides = array<i32>} : memref<16x128xf32, #tpu.memory_space<vmem>>, vector<16x128xf32>,
    return
  }
  func.func @transform_0(%arg0: i32, %arg1: i32, %arg2: memref<1xf32, #tpu.memory_space<smem>>) -> (i32, i32) {
    %c0_i32 = arith.constant 0 : i32
    %c0_i32_0 = arith.constant 0 : i32
    %c0_i32_1 = arith.constant 0 : i32
    return %c0_i32, %c0_i32_0 : i32, i32
  }
  func.func @transform_1(%arg0: i32, %arg1: i32, %arg2: memref<1xf32, #tpu.memory_space<smem>>) -> (i32, i32) {
    %c0_i32 = arith.constant 0 : i32
    %c0_i32_0 = arith.constant 0 : i32
    %c0_i32_1 = arith.constant 0 : i32
    return %c0_i32, %c0_i32_0 : i32, i32
  }
  func.func @transform_2(%arg0: i32, %arg1: i32, %arg2: memref<1xf32, #tpu.memory_space<smem>>) -> (i32, i32) {
    %c0_i32 = arith.constant 0 : i32
    %c0_i32_0 = arith.constant 0 : i32
    %c0_i32_1 = arith.constant 0 : i32
    return %c0_i32, %c0_i32_0 : i32, i32
  }
  func.func @transform_3(%arg0: i32, %arg1: i32, %arg2: memref<1xf32, #tpu.memory_space<smem>>) -> (i32, i32) {
    %c0_i32 = arith.constant 0 : i32
    %c0_i32_0 = arith.constant 0 : i32
    %c0_i32_1 = arith.constant 0 : i32
    return %c0_i32, %c0_i32_0 : i32, i32
  }
  func.func @transform_4(%arg0: i32, %arg1: i32, %arg2: memref<1xf32, #tpu.memory_space<smem>>) -> (i32, i32) {
    %c0_i32 = arith.constant 0 : i32
    %c0_i32_0 = arith.constant 0 : i32
    return %arg0, %c0_i32 : i32, i32
  }
  func.func @transform_5(%arg0: i32, %arg1: i32, %arg2: memref<1xf32, #tpu.memory_space<smem>>) -> (i32, i32) {
    %c0_i32 = arith.constant 0 : i32
    %c0_i32_0 = arith.constant 0 : i32
    return %arg0, %c0_i32 : i32, i32
  }
  func.func @transform_6(%arg0: i32, %arg1: i32, %arg2: memref<1xf32, #tpu.memory_space<smem>>) -> (i32, i32) {
    %c0_i32 = arith.constant 0 : i32
    %c0_i32_0 = arith.constant 0 : i32
    return %c0_i32, %arg1 : i32, i32
  }
  func.func @transform_7(%arg0: i32, %arg1: i32, %arg2: memref<1xf32, #tpu.memory_space<smem>>) -> (i32, i32) {
    %c0_i32 = arith.constant 0 : i32
    %c0_i32_0 = arith.constant 0 : i32
    return %c0_i32, %arg1 : i32, i32
  }
  func.func @transform_8(%arg0: i32, %arg1: i32, %arg2: memref<1xf32, #tpu.memory_space<smem>>) -> (i32, i32) {
    %c0_i32 = arith.constant 0 : i32
    return %arg0, %arg1 : i32, i32
  }
  func.func @transform_9(%arg0: i32, %arg1: i32, %arg2: memref<1xf32, #tpu.memory_space<smem>>) -> (i32, i32) {
    %c0_i32 = arith.constant 0 : i32
    return %arg0, %arg1 : i32, i32
  }
}

</mosaic_0001>

<bundles_post_ra>
// kernel: tpu_custom_call.1
= control target key start
LH: loop header
LB: loop body
LE: loop exit
PB: predicated region body
PF: predicated region fallthrough
CT: control target
= control target key end

     0   :  { %s338_s0 = inlined_call_operand.<no memory space> [shape: f32[1], index: 0, kind: input, shape index: {}]   ;;  %s339_s1 = inlined_call_operand.vmem [shape: f32[1,32], index: 1, kind: input, shape index: {}]   ;;  %s340_s2 = inlined_call_operand.vmem [shape: f32[1,32], index: 2, kind: input, shape index: {}]   ;;  %s341_s3 = inlined_call_operand.vmem [shape: f32[32,1], index: 3, kind: input, shape index: {}]   ;;  %s342_s4 = inlined_call_operand.vmem [shape: f32[32,1], index: 4, kind: input, shape index: {}]   ;;  %s343_s5 = inlined_call_operand.vmem [shape: f32[16,32], index: 5, kind: input, shape index: {}]   ;;  %s344_s6 = inlined_call_operand.vmem [shape: f32[16,1], index: 6, kind: input, shape index: {}]   ;;  %s345_s7 = inlined_call_operand.vmem [shape: f32[32,128], index: 7, kind: input, shape index: {}]   ;;  %s346_s8 = inlined_call_operand.vmem [shape: f32[1,128], index: 8, kind: input, shape index: {}]   ;;  %s347_s9 = inlined_call_operand.vmem [shape: f32[16,128], index: 9, kind: input, shape index: {}]   ;;  %s348_s10 = inlined_call_operand.hbm [shape: f32[16,128], index: 10, kind: output, shape index: {}]  }
   0x1   :  { %v43_v0 = vld [vmem:[%s341_s3 + $0x18] sm:$0xff]  ;;  %v44_v1 = vstv %s338_s0  ;;  %v42_v3 = vld [vmem:[%s341_s3 + $0x10] sm:$0xff]  ;;  %v41_v7 = vld [vmem:[%s341_s3 + $0x8] sm:$0xff] }
   0x2   :  { %v52_v2 = vld [vmem:[%s342_s4 + $0x18] sm:$0xff]  ;;  %v48_v4 = vmul.f32 %v44_v1, %v43_v0  ;;  %v47_v5 = vmul.f32 %v44_v1, %v42_v3  ;;  %v51_v6 = vld [vmem:[%s342_s4 + $0x10] sm:$0xff]  ;;  %v50_v8 = vld [vmem:[%s342_s4 + $0x8] sm:$0xff]  ;;  %v46_v9 = vmul.f32 %v44_v1, %v41_v7 }
   0x3   :  { %v40_v10 = vld [vmem:[%s341_s3] sm:$0xff]  ;;  %v107_v15 = vld [vmem:[%s345_s7 + $0x18] sm:$0xff]  ;;  %v106_v16 = vld [vmem:[%s345_s7 + $0x10] sm:$0xff] }
   0x4   :  { %v49_v11 = vld [vmem:[%s342_s4] sm:$0xff]  ;;  %v56_v12 = vadd.f32 %v52_v2, %v48_v4  ;;  %v55_v13 = vadd.f32 %v51_v6, %v47_v5  ;;  %v45_v14 = vmul.f32 %v44_v1, %v40_v10  ;;  %v54_v17 = vadd.f32 %v50_v8, %v46_v9  ;;  %125 = vmatpush.msra.mxu1 %v107_v15  ;;  %v105_v22 = vld [vmem:[%s345_s7 + $0x8] sm:$0xff] }
   0x5   :  { %v98_v18 = vld [vmem:[%s339_s1] sm:$0x1] }
   0x6   :  { %v60_v19 = vmax.f32 %v56_v12, 0.0  ;;  %v59_v20 = vmax.f32 %v55_v13, 0.0  ;;  %v53_v21 = vadd.f32 %v49_v11, %v45_v14  ;;  %v100_v23 = vmul.f32 %v98_v18, %v44_v1  ;;  %v101_v24 = vld [vmem:[%s340_s2] sm:$0x1]  ;;  %126 = vmatpush.msra.mxu1 %v106_v16 }
   0x7   :  { %16 = vsyncpa [#allocation6], 0  ;;  %v58_v25 = vmax.f32 %v54_v17, 0.0  ;;  %v104_v26 = vld [vmem:[%s345_s7] sm:$0xff]  ;;  %vm65_vm0 = vcmask 261120   ;;  %v62_v31 = vld [vmem:[%s343_s5 + $0x8] sm:$0xff] }
   0x8   :  { %84 = vmatpush.msra.mxu0 %v60_v19  ;;  %175 = vmatpush.msra.mxu2 %v60_v19  ;;  %v102_v27 = vadd.f32 %v101_v24, %v100_v23  ;;  %v57_v28 = vmax.f32 %v53_v21, 0.0  ;;  %v61_v30 = vld [vmem:[%s343_s5] sm:$0xff]  ;;  %v210_v32 = vmov 0   ;;  %vm95_vm1 = vcmask 7168   ;;  %v64_v36 = vld [vmem:[%s344_s6 + $0x8] sm:$0xff]  ;;  %s160_s30 = sshll.u32 %s348_s10, 4  ;;  %s161_s30 = int_to_ptr.hbm [resolvable:$true] %s160_s30 }
   0x9   :  { %127 = vmatpush.msra.mxu1 %v105_v22  ;;  %183 = vset.pattern.permute.xlu0 %v210_v32  ;;  %v63_v33 = vld [vmem:[%s344_s6] sm:$0xff]  ;;  %s211_s6 = smov [#allocation5]   ;;  %v134_v49 = vld [vmem:[%s347_s9 + $0x8] sm:$0xff]  ;;  %s213_s13 = smov 8  }
   0xa   :  { %85 = vmatpush.msra.mxu0 %v59_v20  ;;  %176 = vmatpush.msra.mxu2 %v59_v20  ;;  %v103_v29 = vmax.f32 %v102_v27, 0.0  ;;  %v108_v41 = vld [vmem:[%s346_s8] sm:$0x1]  ;;  %s158_s27 = sshll.u32 %s211_s6, 4  ;;  %s212_s8 = smov 128   ;;  %s159_s27 = int_to_ptr.vmem [resolvable:$true] %s158_s27 }
   0xb   :  { %128 = vmatpush.msra.mxu1 %v104_v26  ;;  %v133_v45 = vld [vmem:[%s347_s9] sm:$0xff] }
   0xc   :  { %86 = vmatpush.msra.mxu0 %v58_v25  ;;  %177 = vmatpush.msra.mxu2 %v58_v25 }
   0xd   :  { %174 = vmatmul.msk.f32.vlgmr.msra.gmra.mxu1 %vm65_vm0, %v103_v29 }
   0xe   :  { %87 = vmatpush.msra.mxu0 %v57_v28  ;;  %178 = vmatpush.msra.mxu2 %v57_v28 }
   0xf   :  { %172 = vmatmul.msk.f32.vlgmr.msra.gmra.mxu0 %vm65_vm0, %v61_v30  ;;  %173 = vmatmul.msk.f32.vlgmr.msra.gmra.mxu2 %vm65_vm0, %v62_v31 }
  0x8a   :  { %v130_v42 = vpop.f32.mrf.mxu1 }
  0x8b   :  { %v131_v43 = vadd.f32 %v130_v42, %v108_v41 }
  0x8c   :  { %v89_v34 = vpop.f32.mrf.mxu0 }
  0x8d   :  { %v90_v35 = vadd.f32 %v89_v34, %v63_v33  ;;  %v147_v44 = vperm.slane %v131_v43, 0 }
  0x8f   :  { %96 = vst.msk [vmem:[#allocation2] sm:$0xff] %vm95_vm1, %v90_v35 }
  0x92   :  { %v92_v37 = vpop.f32.mrf.mxu2 }
  0x93   :  { %v93_v38 = vadd.f32 %v92_v37, %v64_v36 }
  0x95   :  { %97 = vst.msk [vmem:[#allocation2 + $0x8] sm:$0xff] %vm95_vm1, %v93_v38 }
  0x96   :  { %v135_v39 = vld [vmem:[#allocation2] sm:$0xff] }
  0x97   :  { %139 = vperm.xlu0 %183, %v135_v39  }
  0x9c   :  { %v136_v40 = vld [vmem:[#allocation2 + $0x8] sm:$0xff] }
  0x9f   :  { %144 = vperm.xlu0 %183, %v136_v40  }
 0x109   :  { %v140_v46 = vpop.permute.xlu0 %139 }
 0x10a   :  { %v148_v47 = vmul.f32 %v147_v44, %v140_v46 }
 0x10c   :  { %v150_v48 = vadd.f32 %v148_v47, %v133_v45 }
 0x10e   :  { %152 = vst [vmem:[#allocation5] sm:$0xff] %v150_v48 }
 0x111   :  { %v145_v50 = vpop.permute.xlu0 %144 }
 0x112   :  { %v149_v51 = vmul.f32 %v147_v44, %v145_v50 }
 0x114   :  { %v151_v52 = vadd.f32 %v149_v51, %v134_v49 }
 0x116   :  { %153 = vst [vmem:[#allocation5 + $0x8] sm:$0xff] %v151_v52 }
 0x117   :  { %166 = dma.vmem_to_hbm [thread:$0]  %s159_s27, 256, %s161_s30, [#allocation6], %s212_s8, %s212_s8, %s213_s13  }
 0x118   :  { %208 = dma.done.wait [#allocation6], 256  }
 0x119   :  { %209 = vsyncadd [#allocation6], 4294967040 }
 0x11a   :  { %171 = vsyncpa [#allocation6], 1 }

</bundles_post_ra>
